<compile_context>
chip_gen: v6e
topology: v6e:2x2x1
jax: 0.10.0
libtpu: 0.0.40
codegen_flags: <defaults>
</compile_context>

<pallas_src>
import functools
import math

import jax
import jax.numpy as jnp
from jax.experimental import pallas as pl
from jax.experimental.pallas import tpu as pltpu

_HIDDEN_PAD = 128  # pad aux_net_dim (100) up to one full f32 vreg lane width


def _mlp_kernel(x_ref, w1_ref, b1_ref, w2_ref, b2_ref, o_ref, *, tanh_dtype):
    """One batch tile of: y = tanh(x @ W1' + b1') . w2_row + b2, stored lane-dense."""
    # (TB, H) = (TB, D) @ (D, H) on the MXU, f32 accumulate.
    h = jnp.dot(x_ref[...], w1_ref[...], preferred_element_type=jnp.float32)
    # Bias + tanh.  tanh_dtype=bf16 halves EUP/VPU work on v6e/v7x.
    h = jnp.tanh((h + b1_ref[...]).astype(tanh_dtype))
    # Second layer (H -> 1): VPU multiply + XLU lane reduction, f32 accumulate.
    y = jnp.sum((h * w2_ref[...].astype(tanh_dtype)).astype(jnp.float32),
                axis=-1, keepdims=True)                       # (TB, 1)
    # Lane-dense store: transpose (TB,1) -> (1,TB) (XLU vxpose, free slot here)
    # so the output block is one unmasked lane-major row instead of TB masked
    # single-lane partial stores.
    o_ref[0] = (y + b2_ref[0]).T.astype(o_ref.dtype)          # o_ref block: (1, 1, TB)


def input_dependent_baseline(x, w1, b1, w2_row, b2, *, block_b=4096,
                             tanh_dtype=jnp.float32):
    """x: (B, D); w1: (D, H) folded+padded; b1/w2_row: (1, H); b2: (1,) scalar."""
    B, D = x.shape
    H = w1.shape[1]

    if B <= block_b:
        tb = B                                   # single tile: blocks == full dims
    else:
        tb = max(128, (block_b // 128) * 128)    # lane-aligned, 8-sublane aligned
    n_tiles = pl.cdiv(B, tb)                     # partial last x block handled by Pallas

    kernel = functools.partial(_mlp_kernel, tanh_dtype=tanh_dtype)
    out = pl.pallas_call(
        kernel,
        out_shape=jax.ShapeDtypeStruct((n_tiles, 1, tb), jnp.float32),
        grid=(n_tiles,),
        in_specs=[
            # x tile; add pipeline_mode=pl.Buffered(3) only if the trace still
            # shows exposed x DMA after enlarging tb (sweep knob, not default).
            pl.BlockSpec((tb, D), lambda i: (i, 0)),
            pl.BlockSpec((D, H), lambda i: (0, 0)),              # W1, VMEM-resident
            pl.BlockSpec((1, H), lambda i: (0, 0)),              # b1
            pl.BlockSpec((1, H), lambda i: (0, 0)),              # w2 as a row
            pl.BlockSpec(memory_space=pltpu.MemorySpace.SMEM),   # b2 scalar
        ],
        # Lane-dense output: last two block dims (1, tb) -> full unmasked vst rows.
        out_specs=pl.BlockSpec((1, 1, tb), lambda i: (i, 0, 0)),
        compiler_params=pltpu.CompilerParams(
            dimension_semantics=("parallel",),
            vmem_limit_bytes=48 * 1024 * 1024,   # explicit budget, fits all gens
        ),
    )(x, w1, b1, w2_row, b2)
    # (n_tiles, 1, tb) row-major flatten -> first B rows -> (B, 1); metadata-level.
    return out.reshape(-1)[:B].reshape(B, 1)


def init_params(key, input_dim, aux_net_dim=100):
    """Deterministic init mimicking PyTorch nn.Linear defaults
    (U(-1/sqrt(fan_in), 1/sqrt(fan_in)) for both weight and bias).
    Weights stored as (in, out) so forward is plain x @ W + b."""
    k1, k2, k3, k4 = jax.random.split(key, 4)
    bound1 = 1.0 / math.sqrt(input_dim)
    w1 = jax.random.uniform(k1, (input_dim, aux_net_dim), jnp.float32, -bound1, bound1)
    b1 = jax.random.uniform(k2, (1, aux_net_dim), jnp.float32, -bound1, bound1)
    bound2 = 1.0 / math.sqrt(aux_net_dim)
    w2 = jax.random.uniform(k3, (aux_net_dim, 1), jnp.float32, -bound2, bound2)
    b2 = jax.random.uniform(k4, (1, 1), jnp.float32, -bound2, bound2)
    return w1, b1, w2, b2


def prepare_params(w1, b1, w2, b2, hidden_pad=_HIDDEN_PAD):
    """One-time host-side parameter transform (all in f32).

    1. Fold `2*x - 1` into layer 1:
         tanh((2x-1) @ W1 + b1) == tanh(x @ (2*W1) + (b1 - sum(W1, axis=0)))
    2. Zero-pad hidden dim H up to a multiple of 128 (>= hidden_pad) so every
       vreg on the tanh path is full.  Padded columns give tanh(0)=0 which
       multiplies a zero w2 entry, so results are identical.
    3. Store W2 as a (1, H) row; b2 as a (1,) scalar for SMEM.
    """
    d, h = w1.shape
    w1f = 2.0 * w1
    b1f = b1 - jnp.sum(w1, axis=0, keepdims=True)
    hp = max(hidden_pad, ((h + 127) // 128) * 128)   # always round H up to 128-multiple
    w1p = jnp.zeros((d, hp), jnp.float32).at[:, :h].set(w1f)
    b1p = jnp.zeros((1, hp), jnp.float32).at[:, :h].set(b1f)
    w2p = jnp.zeros((1, hp), jnp.float32).at[:, :h].set(w2[:, 0])
    b2p = jnp.asarray(b2, jnp.float32).reshape(1)
    return w1p, b1p, w2p, b2p


if __name__ == "__main__":
    key = jax.random.PRNGKey(0)
    kx, kp, kx2 = jax.random.split(key, 3)

    input_dim = 32
    aux_net_dim = 100

    w1, b1, w2, b2 = init_params(kp, input_dim, aux_net_dim)
    w1p, b1p, w2p, b2p = prepare_params(w1, b1, w2, b2)

    # Pure-JAX reference of the ORIGINAL module semantics (unfolded, unpadded).
    def ref_fwd(xx):
        return jnp.tanh((2.0 * xx - 1.0) @ w1 + b1) @ w2 + b2

    # 1) Small batch, single tile, f32 everywhere.
    x = jax.random.normal(kx, (8, input_dim), jnp.float32)
    out = jax.block_until_ready(input_dependent_baseline(x, w1p, b1p, w2p, b2p))
    assert out.shape == (8, 1)
    assert jnp.allclose(out, ref_fwd(x), atol=1e-5, rtol=1e-5)

    # 2) Multi-tile path with a ragged last block (grid + lane-dense output + no pad).
    x2 = jax.random.normal(kx2, (300, input_dim), jnp.float32)
    out2 = jax.block_until_ready(
        input_dependent_baseline(x2, w1p, b1p, w2p, b2p, block_b=128))
    assert out2.shape == (300, 1)
    assert jnp.allclose(out2, ref_fwd(x2), atol=1e-5, rtol=1e-5)

    # 3) bf16 tanh/VPU path (recommended on v6e/v7x); looser tolerance.
    out3 = jax.block_until_ready(
        input_dependent_baseline(x2, w1p, b1p, w2p, b2p, block_b=128,
                                 tanh_dtype=jnp.bfloat16))
    assert out3.shape == (300, 1)
    assert jnp.allclose(out3, ref_fwd(x2), atol=5e-2)

    print("KERNEL_OK")
</pallas_src>

<mosaic_0001>
module attributes {stable_mosaic.version = 11 : i64} {
  func.func @_mlp_kernel(%arg0: i32, %arg1: memref<8x32xf32, #tpu.memory_space<vmem>>, %arg2: memref<32x128xf32, #tpu.memory_space<vmem>>, %arg3: memref<1x128xf32, #tpu.memory_space<vmem>>, %arg4: memref<1x128xf32, #tpu.memory_space<vmem>>, %arg5: memref<1xf32, #tpu.memory_space<smem>>, %arg6: memref<1x1x8xf32, #tpu.memory_space<vmem>>) attributes {dimension_semantics = [#tpu.dimension_semantics<parallel>], iteration_bounds = array<i64: 1>, scalar_prefetch = 0 : i64, scratch_operands = 0 : i64, tpu.core_type = #tpu.core_type<tc>, window_params = [{transform_indices = @transform_0, window_bounds = array<i64: 8, 32>}, {pipeline_mode = #tpu.pipeline_mode<synchronous>, transform_indices = @transform_1, window_bounds = array<i64: 32, 128>}, {pipeline_mode = #tpu.pipeline_mode<synchronous>, transform_indices = @transform_2, window_bounds = array<i64: 1, 128>}, {pipeline_mode = #tpu.pipeline_mode<synchronous>, transform_indices = @transform_3, window_bounds = array<i64: 1, 128>}, {transform_indices = @transform_4, window_bounds = array<i64: 1>}, {transform_indices = @transform_5, window_bounds = array<i64: 1, 1, 8>}]} {
    %c0 = arith.constant 0 : index
    %c0_0 = arith.constant 0 : index
    %0 = vector.load %arg1[%c0, %c0_0] : memref<8x32xf32, #tpu.memory_space<vmem>>, vector<8x32xf32>
    %c0_1 = arith.constant 0 : index
    %c0_2 = arith.constant 0 : index
    %1 = vector.load %arg2[%c0_1, %c0_2] : memref<32x128xf32, #tpu.memory_space<vmem>>, vector<32x128xf32>
    %cst = arith.constant dense<0.000000e+00> : vector<8x128xf32>
    %2 = tpu.matmul %0, %1, %cst {dimension_numbers = #tpu.dot_dimension_numbers<[1], [0], [0], [1], [0, 0, 1, 1], [], []>} : vector<8x32xf32>, vector<32x128xf32>, vector<8x128xf32> -> vector<8x128xf32>
    %c0_3 = arith.constant 0 : index
    %c0_4 = arith.constant 0 : index
    %3 = vector.load %arg3[%c0_3, %c0_4] : memref<1x128xf32, #tpu.memory_space<vmem>>, vector<1x128xf32>
    %4 = vector.broadcast %3 : vector<1x128xf32> to vector<8x128xf32>
    %5 = arith.addf %2, %4 : vector<8x128xf32>
    %6 = math.tanh %5 : vector<8x128xf32>
    %c0_5 = arith.constant 0 : index
    %c0_6 = arith.constant 0 : index
    %7 = vector.load %arg4[%c0_5, %c0_6] : memref<1x128xf32, #tpu.memory_space<vmem>>, vector<1x128xf32>
    %8 = vector.broadcast %7 : vector<1x128xf32> to vector<8x128xf32>
    %9 = arith.mulf %6, %8 : vector<8x128xf32>
    %cst_7 = arith.constant dense<0.000000e+00> : vector<8xf32>
    %10 = vector.multi_reduction <add>, %9, %cst_7 [1] : vector<8x128xf32> to vector<8xf32>
    %11 = vector.shape_cast %10 : vector<8xf32> to vector<8x1xf32>
    %c0_8 = arith.constant 0 : index
    %12 = memref.load %arg5[%c0_8] : memref<1xf32, #tpu.memory_space<smem>>
    %13 = vector.broadcast %12 : f32 to vector<8x1xf32>
    %14 = arith.addf %11, %13 : vector<8x1xf32>
    %15 = tpu.transpose %14, [1, 0] : vector<8x1xf32> -> vector<1x8xf32>
    %c0_9 = arith.constant 0 : index
    %c0_10 = arith.constant 0 : index
    %c0_11 = arith.constant 0 : index
    %16 = vector.load %arg6[%c0_9, %c0_10, %c0_11] : memref<1x1x8xf32, #tpu.memory_space<vmem>>, vector<1x1x8xf32>
    %17 = vector.shape_cast %16 : vector<1x1x8xf32> to vector<1x8xf32>
    %18 = vector.shape_cast %15 : vector<1x8xf32> to vector<1x1x8xf32>
    tpu.vector_store %arg6[%c0_9, %c0_10, %c0_11], %18 {strides = array<i32>} : memref<1x1x8xf32, #tpu.memory_space<vmem>>, vector<1x1x8xf32>,
    return
  }
  func.func @transform_0(%arg0: i32) -> (i32, i32) {
    %c0_i32 = arith.constant 0 : i32
    %c0_i32_0 = arith.constant 0 : i32
    return %arg0, %c0_i32 : i32, i32
  }
  func.func @transform_1(%arg0: i32) -> (i32, i32) {
    %c0_i32 = arith.constant 0 : i32
    %c0_i32_0 = arith.constant 0 : i32
    %c0_i32_1 = arith.constant 0 : i32
    return %c0_i32, %c0_i32_0 : i32, i32
  }
  func.func @transform_2(%arg0: i32) -> (i32, i32) {
    %c0_i32 = arith.constant 0 : i32
    %c0_i32_0 = arith.constant 0 : i32
    %c0_i32_1 = arith.constant 0 : i32
    return %c0_i32, %c0_i32_0 : i32, i32
  }
  func.func @transform_3(%arg0: i32) -> (i32, i32) {
    %c0_i32 = arith.constant 0 : i32
    %c0_i32_0 = arith.constant 0 : i32
    %c0_i32_1 = arith.constant 0 : i32
    return %c0_i32, %c0_i32_0 : i32, i32
  }
  func.func @transform_4(%arg0: i32) -> i32 {
    %c0_i32 = arith.constant 0 : i32
    %c0_i32_0 = arith.constant 0 : i32
    return %c0_i32 : i32
  }
  func.func @transform_5(%arg0: i32) -> (i32, i32, i32) {
    %c0_i32 = arith.constant 0 : i32
    %c0_i32_0 = arith.constant 0 : i32
    %c0_i32_1 = arith.constant 0 : i32
    return %arg0, %c0_i32, %c0_i32_0 : i32, i32, i32
  }
}

</mosaic_0001>

<bundles_post_ra>
// kernel: tpu_custom_call.1
= control target key start
LH: loop header
LB: loop body
LE: loop exit
PB: predicated region body
PF: predicated region fallthrough
CT: control target
= control target key end

     0   :  { %11 = vsyncpa [#allocation4], 0  ;;  %s347_s0 = inlined_call_operand.hbm [shape: f32[8,32], index: 0, kind: input, shape index: {}]   ;;  %s348_s1 = inlined_call_operand.hbm [shape: f32[32,128], index: 1, kind: input, shape index: {}]   ;;  %s349_s2 = inlined_call_operand.vmem [shape: f32[1,128], index: 2, kind: input, shape index: {}]   ;;  %s350_s3 = inlined_call_operand.vmem [shape: f32[1,128], index: 3, kind: input, shape index: {}]   ;;  %s351_s4 = inlined_call_operand.<no memory space> [shape: f32[1], index: 4, kind: input, shape index: {}]   ;;  %s352_s5 = inlined_call_operand.hbm [shape: f32[1,1,8], index: 5, kind: output, shape index: {}]  }
   0x1   :  { %12 = vsyncpa [#allocation7], 0 }
   0x2   :  { %13 = vsyncpa [#allocation5], 0  ;;  %s292_s18 = smov [#allocation3]   ;;  %s293_s20 = smov [#allocation6]  }
   0x3   :  { %s20_s19 = sshll.u32 %s292_s18, 4  ;;  %s29_s21 = sshll.u32 %s293_s20, 4  ;;  %s21_s19 = int_to_ptr.vmem [resolvable:$true] %s20_s19  ;;  %s30_s21 = int_to_ptr.vmem [resolvable:$true] %s29_s21 }
   0x4   :  { %s234_s22 = scalar_lea.vmem %s21_s19, 128  ;;  %p239_p1 = scmp.lt.s32.totalorder %s21_s19, %s21_s19 }
   0x5   :  { %p235_p0 = scmp.ne.s32.totalorder %s21_s19, %s234_s22  ;;  %p240_p2 = scmp.lt.s32.totalorder %s234_s22, %s234_s22 }
   0x7   :  { %p241_p3 = por %p240_p2, %p239_p1 }
   0x9   :  { %p242_p4 = pnand %p241_p3, %p235_p0 }
   0xb   :  { %245 = shalt.err (!%p242_p4)
}
   0xc   :  { %23 = dma.hbm_to_vmem [thread:$0]  %s347_s0, 128, %s21_s19, [#allocation4]  }
   0xd   :  { %s254_s25 = scalar_lea.vmem %s30_s21, 512  ;;  %p259_p6 = scmp.lt.s32.totalorder %s30_s21, %s30_s21 }
   0xe   :  { %p255_p5 = scmp.ne.s32.totalorder %s30_s21, %s254_s25  ;;  %p260_p7 = scmp.lt.s32.totalorder %s254_s25, %s254_s25 }
  0x10   :  { %p261_p8 = por %p260_p7, %p259_p6 }
  0x12   :  { %p262_p9 = pnand %p261_p8, %p255_p5 }
  0x14   :  { %265 = shalt.err (!%p262_p9)
}
  0x15   :  { %s294_s26 = smov 128   ;;  %s295_s27 = smov 8  }
  0x16   :  { %35 = dma.hbm_to_vmem [thread:$0]  %s348_s1, 512, %s30_s21, [#allocation7], %s294_s26, %s294_s26, %s295_s27  }
  0x17   :  { %286 = dma.done.wait [#allocation4], 128  }
  0x18   :  { %287 = vsyncadd [#allocation4], 4294967168 }
  0x19   :  { %288 = dma.done.wait [#allocation7], 512  }
  0x1a   :  { %289 = vsyncadd [#allocation7], 4294966784  ;;  %v296_v0 = vmov 0.0   ;;  %vm297_vm0 = vmmov 0   ;;  %v52_v1 = vld [vmem:[#allocation6 + $0x18] sm:$0xff]  ;;  %v51_v2 = vld [vmem:[#allocation6 + $0x10] sm:$0xff]  ;;  %v146_v13 = vstv %s351_s4 }
  0x1b   :  { %206 = vmatprep.subr.mxu0 %v296_v0  ;;  %214 = vmatprep.mubr.msk.f32.mxu0 %vm297_vm0, %v296_v0  ;;  %v50_v3 = vld [vmem:[#allocation6 + $0x8] sm:$0xff]  ;;  %v49_v4 = vld [vmem:[#allocation6] sm:$0xff]  ;;  %v48_v5 = vld [vmem:[#allocation3] sm:$0xff]  ;;  %vm60_vm1 = vcmask 261120   ;;  %s298_s9 = smov [#allocation8]   ;;  %vm180_vm2 = vcmask 57344  }
  0x1c   :  { %207 = vmatpush3.msra.mxu0 %v52_v1  ;;  %v198_v6 = vld [vmem:[%s349_s2] ss:$0 sm:$0xff]  ;;  %s188_s2 = sshll.u32 %s298_s9, 4  ;;  %s189_s2 = int_to_ptr.vmem [resolvable:$true] %s188_s2 }
  0x1d   :  { %208 = vmatprep.subr.mxu0 %v296_v0  ;;  %v200_v10 = vld [vmem:[%s350_s3] ss:$0 sm:$0xff]  ;;  %s266_s10 = scalar_lea.vmem %s189_s2, 16  ;;  %s270_s11 = scalar_lea.vmem %s189_s2, 32 }
  0x1e   :  { %209 = vmatpush3.msra.mxu0 %v51_v2  ;;  %p267_p10 = scmp.ne.s32.totalorder %s189_s2, %s266_s10  ;;  %p271_p11 = scmp.lt.s32.totalorder %s189_s2, %s189_s2 }
  0x1f   :  { %210 = vmatprep.subr.mxu0 %v296_v0  ;;  %p272_p12 = scmp.lt.s32.totalorder %s270_s11, %s266_s10 }
  0x20   :  { %211 = vmatpush3.msra.mxu0 %v50_v3 }
  0x21   :  { %212 = vmatprep.subr.mxu0 %v296_v0  ;;  %p273_p13 = por %p272_p12, %p271_p11 }
  0x22   :  { %213 = vmatpush3.msra.mxu0 %v49_v4 }
  0x23   :  { %215 = vmatmul.mubr.msk.f32.vlgmr.msra.gmra.mxu0 %vm60_vm1, %v48_v5  ;;  %p274_p0 = pnand %p273_p13, %p267_p10 }
  0xe3   :  { %v130_v7 = vpop.f32.mrf.mxu0 }
  0xe4   :  { %v131_v8 = vadd.f32 %v198_v6, %v130_v7 }
  0xe5   :  { %v216_v9 = vpop.f32.mrf.mxu0 }
  0xe6   :  { %224 = vtanh.f32 %v131_v8 }
  0xf3   :  { %v225_v11 = vpop.eup %224 }
  0xf4   :  { %v142_v12 = vmul.f32 %v225_v11, %v200_v10 }
  0xf6   :  { %143 = vadd.xlane.f32.xlu0 %v142_v12 }
 0x17f   :  { %v144_v14 = vpop.xlane.xlu0 %143 }
 0x180   :  { %v147_v15 = vadd.f32 %v146_v13, %v144_v14 }
 0x182   :  { %148 = vxpose.xlu0.b32.start.end [1/1] (short) (narrow) %v147_v15, 8 }
 0x1fe   :  { %v164_v16 = vpop.trf.xlu0 }
 0x1ff   :  { %181 = vst.msk [vmem:[#allocation8] sm:$0x1] %vm180_vm2, %v164_v16 }
 0x200   :  { %277 = shalt.err (!%p274_p0)
}
 0x201   :  { %191 = dma.vmem_to_hbm [thread:$0]  %s189_s2, 16, %s352_s5, [#allocation5]  }
 0x202   :  { %290 = dma.done.wait [#allocation5], 16  }
 0x203   :  { %291 = vsyncadd [#allocation5], 4294967280 }
 0x204   :  { %195 = vsyncpa [#allocation4], 1 }
 0x205   :  { %196 = vsyncpa [#allocation7], 1 }
 0x206   :  { %197 = vsyncpa [#allocation5], 1 }

</bundles_post_ra>
